<compile_context>
chip_gen: v6e
topology: v6e:2x2x1
jax: 0.10.0
libtpu: 0.0.40
codegen_flags: <defaults>
</compile_context>

<pallas_src>
import functools

import jax
import jax.numpy as jnp
from jax import lax
from jax.experimental import pallas as pl
from jax.experimental.pallas import tpu as pltpu

_LANE = 128
_SUB = 8
_STRIP_ROWS = 512  # 256 KiB (f32) per input per strip -> bounded vreg/VMEM pressure


def _bce_kernel(x_ref, t_ref, num_ref, tsum_ref, *,
                cancer_weight, steps, tile_rows, strip_rows, n_strips,
                total_rows, binary_targets):
    c = pl.program_id(0)           # megacore-parallel axis
    j = pl.program_id(1)           # reduction axis (output block stays resident)

    @pl.when(j == 0)
    def _():
        num_ref[...] = jnp.zeros_like(num_ref)
        tsum_ref[...] = jnp.zeros_like(tsum_ref)

    # Logical (unclamped) first row of this block. Row-level int32 math only,
    # so this is safe up to ~2**31 rows (~2**38 elements).
    base_row = (c * steps + j) * tile_rows

    def tile_partial_sums(masked):
        """Fold this (tile_rows, 128) block into two (8,128) vreg partials."""
        def strip_body(s, carry):
            num_acc, t_acc = carry
            r0 = pl.multiple_of(s * strip_rows, strip_rows)
            x = x_ref[pl.ds(r0, strip_rows), :].astype(jnp.float32)
            t = t_ref[pl.ds(r0, strip_rows), :].astype(jnp.float32)
            p = jax.nn.sigmoid(x)                         # 1 EUP op / element
            if binary_targets:
                # Single-log fast path (exact only for t in {0, 1}).
                pos = t > 0.5
                arg = jnp.where(pos, p, 1.0 - p) + 0.0001
                contrib = -jnp.where(pos, cancer_weight, 1.0) * jnp.log(arg)
            else:
                # Exact soft-label path (matches the PyTorch module).
                res = -(t * jnp.log(p + 0.0001)
                        + (1.0 - t) * jnp.log(1.0 - p + 0.0001))
                contrib = res * (t * (cancer_weight - 1.0) + 1.0)
            if masked:
                # Only the ragged final block takes this path; partial-block
                # contents are unspecified, so mask BOTH accumulations.
                row = lax.broadcasted_iota(jnp.int32, (strip_rows, _LANE), 0)
                valid = (base_row + r0 + row) < total_rows
                contrib = jnp.where(valid, contrib, 0.0)
                t = jnp.where(valid, t, 0.0)
            # (strip,128) -> (strip/8, 8, 128); sum(axis=0) is plain VPU adds
            # into a single (8,128) vreg-shaped partial (no cross-lane traffic).
            num_acc = num_acc + contrib.reshape(strip_rows // 8, 8, _LANE).sum(axis=0)
            t_acc = t_acc + t.reshape(strip_rows // 8, 8, _LANE).sum(axis=0)
            return num_acc, t_acc

        zero = jnp.zeros((_SUB, _LANE), jnp.float32)
        return lax.fori_loop(0, n_strips, strip_body, (zero, zero))

    block_is_full = base_row + tile_rows <= total_rows

    @pl.when(block_is_full)
    def _():
        n_p, t_p = tile_partial_sums(masked=False)
        num_ref[...] += n_p
        tsum_ref[...] += t_p

    @pl.when(jnp.logical_not(block_is_full))
    def _():
        n_p, t_p = tile_partial_sums(masked=True)
        num_ref[...] += n_p
        tsum_ref[...] += t_p


def _bce_sums_jax(x, t, cw):
    """Plain-JAX (numerator_sum, target_sum) — used for tiny tails / fallbacks."""
    x = x.astype(jnp.float32)
    t = t.astype(jnp.float32)
    p = jax.nn.sigmoid(x)
    res = -(t * jnp.log(p + 0.0001) + (1.0 - t) * jnp.log(1.0 - p + 0.0001))
    w = t * (cw - 1.0) + 1.0
    return jnp.sum(res * w), jnp.sum(t)


def _detect_num_cores():
    """2 TensorCores per device on v7x (and v4/v5p megacore); 1 on v5e/v6e."""
    try:
        kind = jax.devices()[0].device_kind.lower()
    except Exception:
        return 1
    if "v7" in kind or "v4" in kind or "v5p" in kind:
        return 2
    return 1


def my_loss_bce_pallas(inputs, targets, cancer_weight, *,
                       tile_rows=8192, num_cores=None, binary_targets=False):
    """loss = sum(res * w) / sum(w), matching the PyTorch my_loss_bce module.

    Pass logits/targets as bf16 through HBM to halve bandwidth (the kernel
    upcasts to f32 in VMEM); do NOT cast f32->bf16 in this wrapper.
    """
    assert inputs.shape == targets.shape
    cw = float(cancer_weight)
    numel = int(inputs.size)
    if num_cores is None:
        num_cores = _detect_num_cores()
    tile_rows = max(_SUB, (int(tile_rows) // _SUB) * _SUB)

    flat_x = inputs.reshape(-1)
    flat_t = targets.reshape(-1)

    main = (numel // _LANE) * _LANE
    tail = numel - main
    rows = main // _LANE

    if rows < _SUB:
        # Too small for a single (8,128) tile — pure-JAX path (still exact).
        num, tsum = _bce_sums_jax(flat_x, flat_t, cw)
        return num / ((cw - 1.0) * tsum + float(numel))

    tail_num = jnp.float32(0.0)
    tail_tsum = jnp.float32(0.0)
    if tail > 0:
        # <128-element ragged tail: tiny scalar correction in plain JAX
        # instead of padding/copying the whole tensors.
        tail_num, tail_tsum = _bce_sums_jax(flat_x[main:], flat_t[main:], cw)
        # TODO(synk): this prefix slice still copies `main` elements; keep
        # numel % 128 == 0 upstream for the fully zero-copy path.
        flat_x = flat_x[:main]
        flat_t = flat_t[:main]

    # Free bitcast to a lane-dense slab (row-major contiguous reshape).
    x2 = flat_x.reshape(rows, _LANE)
    t2 = flat_t.reshape(rows, _LANE)

    # --- tile / grid selection ------------------------------------------------
    num_cores = max(1, min(int(num_cores), rows // _SUB))
    per_core = -(-rows // num_cores)
    max_fit = (rows // _SUB) * _SUB                       # block dim <= array dim
    tr = min(tile_rows, ((per_core + _SUB - 1) // _SUB) * _SUB, max_fit)
    if tr > _STRIP_ROWS:
        tr = (tr // _STRIP_ROWS) * _STRIP_ROWS
        strip = _STRIP_ROWS
    else:
        strip = tr
    n_strips = tr // strip
    steps = -(-rows // (num_cores * tr))
    last_block = -(-rows // tr) - 1                        # clamp target for index_map

    kernel = functools.partial(
        _bce_kernel, cancer_weight=cw, steps=steps, tile_rows=tr,
        strip_rows=strip, n_strips=n_strips, total_rows=rows,
        binary_targets=bool(binary_targets))

    # Double-buffered input footprint; raise scoped-VMEM explicitly so large
    # tiles work on v5e's 16 MiB default; stay <= v7x's 64 MiB physical VMEM.
    in_bytes = x2.dtype.itemsize + t2.dtype.itemsize
    vmem_limit = int(min(64 << 20, max(32 << 20, 2 * tr * _LANE * in_bytes + (8 << 20))))

    in_map = lambda c, j: (jnp.minimum(c * steps + j, last_block), 0)
    out_map = lambda c, j: (c, 0)

    part_num, part_t = pl.pallas_call(
        kernel,
        out_shape=(
            jax.ShapeDtypeStruct((num_cores * _SUB, _LANE), jnp.float32),
            jax.ShapeDtypeStruct((num_cores * _SUB, _LANE), jnp.float32),
        ),
        grid_spec=pltpu.PrefetchScalarGridSpec(
            num_scalar_prefetch=0,
            grid=(num_cores, steps),
            in_specs=[
                pl.BlockSpec((tr, _LANE), in_map),
                pl.BlockSpec((tr, _LANE), in_map),
            ],
            out_specs=[
                pl.BlockSpec((_SUB, _LANE), out_map),
                pl.BlockSpec((_SUB, _LANE), out_map),
            ],
        ),
        compiler_params=pltpu.CompilerParams(
            dimension_semantics=(
                ("parallel" if num_cores > 1 else "arbitrary"), "arbitrary"),
            vmem_limit_bytes=vmem_limit,
        ),
    )(x2, t2)

    num = jnp.sum(part_num) + tail_num
    tsum = jnp.sum(part_t) + tail_tsum
    # sum(w) = (cancer_weight - 1) * sum(t) + numel   (folded denominator)
    den = (cw - 1.0) * tsum + float(numel)
    return num / den


def my_loss_bce_ref(inputs, targets, cancer_weight):
    p = jax.nn.sigmoid(inputs.astype(jnp.float32))
    t = targets.astype(jnp.float32)
    res = -(t * jnp.log(p + 0.0001) + (1.0 - t) * jnp.log(1.0 - p + 0.0001))
    w = t * (cancer_weight - 1.0) + 1.0
    return jnp.sum(res * w) / jnp.sum(w)


if __name__ == "__main__":
    key = jax.random.PRNGKey(0)
    k1, k2, k3, k4 = jax.random.split(key, 4)

    cancer_weight = 5.0  # deterministic "parameter" from __init__

    # 1) NCHW binary-target case (numel % 128 == 0 -> zero-copy slab path).
    B, C, H, W = 2, 4, 16, 16
    logits = jax.random.normal(k1, (B, C, H, W), dtype=jnp.float32)
    targets = (jax.random.uniform(k2, (B, C, H, W)) > 0.7).astype(jnp.float32)

    loss = jax.block_until_ready(my_loss_bce_pallas(logits, targets, cancer_weight))
    ref = my_loss_bce_ref(logits, targets, cancer_weight)
    assert jnp.allclose(loss, ref, rtol=1e-5, atol=1e-5), (loss, ref)

    # 2) Optional single-log binary-target fast path (same data, same result).
    loss_fast = jax.block_until_ready(
        my_loss_bce_pallas(logits, targets, cancer_weight, binary_targets=True))
    assert jnp.allclose(loss_fast, ref, rtol=1e-5, atol=1e-5), (loss_fast, ref)

    # 3) Soft labels + ragged numel: exercises the <128-element tail correction
    #    and the masked (partial final block) kernel path.
    shape = (2, 4, 15, 15)  # 1800 elements = 14 full rows + 8-element tail
    logits2 = jax.random.normal(k3, shape, dtype=jnp.float32)
    targets2 = jax.random.uniform(k4, shape, dtype=jnp.float32)
    loss2 = jax.block_until_ready(my_loss_bce_pallas(logits2, targets2, cancer_weight))
    ref2 = my_loss_bce_ref(logits2, targets2, cancer_weight)
    assert jnp.allclose(loss2, ref2, rtol=1e-5, atol=1e-5), (loss2, ref2)

    print("KERNEL_OK")
</pallas_src>

<mosaic_0001>
module attributes {stable_mosaic.version = 11 : i64} {
  func.func @_bce_kernel(%arg0: i32, %arg1: i32, %arg2: memref<16x128xf32, #tpu.memory_space<vmem>>, %arg3: memref<16x128xf32, #tpu.memory_space<vmem>>, %arg4: memref<8x128xf32, #tpu.memory_space<vmem>>, %arg5: memref<8x128xf32, #tpu.memory_space<vmem>>) attributes {dimension_semantics = [#tpu.dimension_semantics<arbitrary>, #tpu.dimension_semantics<arbitrary>], iteration_bounds = array<i64: 1, 1>, scalar_prefetch = 0 : i64, scratch_operands = 0 : i64, tpu.core_type = #tpu.core_type<tc>, window_params = [{transform_indices = @transform_0, window_bounds = array<i64: 16, 128>}, {transform_indices = @transform_1, window_bounds = array<i64: 16, 128>}, {transform_indices = @transform_2, window_bounds = array<i64: 8, 128>}, {transform_indices = @transform_3, window_bounds = array<i64: 8, 128>}]} {
    %c0_i32 = arith.constant 0 : i32
    %0 = arith.cmpi eq, %arg1, %c0_i32 : i32
    %1 = arith.extui %0 : i1 to i32
    %c0_i32_0 = arith.constant 0 : i32
    %2 = arith.cmpi ne, %1, %c0_i32_0 : i32
    scf.if %2 {
      %cst = arith.constant 0.000000e+00 : f32
      %13 = vector.broadcast %cst : f32 to vector<8x128xf32>
      %c0 = arith.constant 0 : index
      %c0_5 = arith.constant 0 : index
      %14 = vector.load %arg4[%c0, %c0_5] : memref<8x128xf32, #tpu.memory_space<vmem>>, vector<8x128xf32>
      tpu.vector_store %arg4[%c0, %c0_5], %13 {strides = array<i32>} : memref<8x128xf32, #tpu.memory_space<vmem>>, vector<8x128xf32>,
      %cst_6 = arith.constant 0.000000e+00 : f32
      %15 = vector.broadcast %cst_6 : f32 to vector<8x128xf32>
      %c0_7 = arith.constant 0 : index
      %c0_8 = arith.constant 0 : index
      %16 = vector.load %arg5[%c0_7, %c0_8] : memref<8x128xf32, #tpu.memory_space<vmem>>, vector<8x128xf32>
      tpu.vector_store %arg5[%c0_7, %c0_8], %15 {strides = array<i32>} : memref<8x128xf32, #tpu.memory_space<vmem>>, vector<8x128xf32>,
    } else {
    }
    %c1_i32 = arith.constant 1 : i32
    %3 = arith.muli %arg0, %c1_i32 : i32
    %4 = arith.addi %3, %arg1 : i32
    %c16_i32 = arith.constant 16 : i32
    %5 = arith.muli %4, %c16_i32 : i32
    %c16_i32_1 = arith.constant 16 : i32
    %6 = arith.addi %5, %c16_i32_1 : i32
    %c16_i32_2 = arith.constant 16 : i32
    %7 = arith.cmpi sle, %6, %c16_i32_2 : i32
    %8 = arith.extui %7 : i1 to i32
    %c0_i32_3 = arith.constant 0 : i32
    %9 = arith.cmpi ne, %8, %c0_i32_3 : i32
    scf.if %9 {
      %cst = arith.constant 0.000000e+00 : f32
      %13 = vector.broadcast %cst : f32 to vector<8x128xf32>
      %c0_i32_5 = arith.constant 0 : i32
      %c16_i32_6 = arith.constant 16 : i32
      %14 = arith.muli %c0_i32_5, %c16_i32_6 : i32
      %15 = tpu.assume_multiple %14, 16 : i32
      %16 = arith.index_cast %15 : i32 to index
      %c0 = arith.constant 0 : index
      %17 = vector.load %arg2[%16, %c0] : memref<16x128xf32, #tpu.memory_space<vmem>>, vector<16x128xf32>
      %18 = arith.index_cast %15 : i32 to index
      %c0_7 = arith.constant 0 : index
      %19 = vector.load %arg3[%18, %c0_7] : memref<16x128xf32, #tpu.memory_space<vmem>>, vector<16x128xf32>
      %20 = arith.negf %17 : vector<16x128xf32>
      %21 = math.exp %20 : vector<16x128xf32>
      %cst_8 = arith.constant 1.000000e+00 : f32
      %22 = vector.broadcast %cst_8 : f32 to vector<16x128xf32>
      %23 = arith.addf %22, %21 : vector<16x128xf32>
      %24 = arith.divf %22, %23 : vector<16x128xf32>
      %cst_9 = arith.constant 9.99999974E-5 : f32
      %25 = vector.broadcast %cst_9 : f32 to vector<16x128xf32>
      %26 = arith.addf %24, %25 : vector<16x128xf32>
      %27 = math.log %26 : vector<16x128xf32>
      %28 = arith.mulf %19, %27 : vector<16x128xf32>
      %cst_10 = arith.constant 1.000000e+00 : f32
      %29 = vector.broadcast %cst_10 : f32 to vector<16x128xf32>
      %30 = arith.subf %29, %19 : vector<16x128xf32>
      %cst_11 = arith.constant 1.000000e+00 : f32
      %31 = vector.broadcast %cst_11 : f32 to vector<16x128xf32>
      %32 = arith.subf %31, %24 : vector<16x128xf32>
      %cst_12 = arith.constant 9.99999974E-5 : f32
      %33 = vector.broadcast %cst_12 : f32 to vector<16x128xf32>
      %34 = arith.addf %32, %33 : vector<16x128xf32>
      %35 = math.log %34 : vector<16x128xf32>
      %36 = arith.mulf %30, %35 : vector<16x128xf32>
      %37 = arith.addf %28, %36 : vector<16x128xf32>
      %cst_13 = arith.constant 0.000000e+00 : f32
      %38 = vector.broadcast %cst_13 : f32 to vector<16x128xf32>
      %39 = arith.subf %38, %37 : vector<16x128xf32>
      %cst_14 = arith.constant 4.000000e+00 : f32
      %40 = vector.broadcast %cst_14 : f32 to vector<16x128xf32>
      %41 = arith.mulf %19, %40 : vector<16x128xf32>
      %cst_15 = arith.constant 1.000000e+00 : f32
      %42 = vector.broadcast %cst_15 : f32 to vector<16x128xf32>
      %43 = arith.addf %41, %42 : vector<16x128xf32>
      %44 = arith.mulf %39, %43 : vector<16x128xf32>
      %45 = vector.shape_cast %44 : vector<16x128xf32> to vector<2x8x128xf32>
      %cst_16 = arith.constant dense<0.000000e+00> : vector<8x128xf32>
      %46 = vector.multi_reduction <add>, %45, %cst_16 [0] : vector<2x8x128xf32> to vector<8x128xf32>
      %47 = arith.addf %13, %46 : vector<8x128xf32>
      %48 = vector.shape_cast %19 : vector<16x128xf32> to vector<2x8x128xf32>
      %cst_17 = arith.constant dense<0.000000e+00> : vector<8x128xf32>
      %49 = vector.multi_reduction <add>, %48, %cst_17 [0] : vector<2x8x128xf32> to vector<8x128xf32>
      %50 = arith.addf %13, %49 : vector<8x128xf32>
      %c1_i32_18 = arith.constant 1 : i32
      %c0_19 = arith.constant 0 : index
      %c0_20 = arith.constant 0 : index
      %51 = vector.load %arg4[%c0_19, %c0_20] : memref<8x128xf32, #tpu.memory_space<vmem>>, vector<8x128xf32>
      %52 = arith.addf %51, %47 : vector<8x128xf32>
      %c0_21 = arith.constant 0 : index
      %c0_22 = arith.constant 0 : index
      %53 = vector.load %arg4[%c0_21, %c0_22] : memref<8x128xf32, #tpu.memory_space<vmem>>, vector<8x128xf32>
      tpu.vector_store %arg4[%c0_21, %c0_22], %52 {strides = array<i32>} : memref<8x128xf32, #tpu.memory_space<vmem>>, vector<8x128xf32>,
      %c0_23 = arith.constant 0 : index
      %c0_24 = arith.constant 0 : index
      %54 = vector.load %arg5[%c0_23, %c0_24] : memref<8x128xf32, #tpu.memory_space<vmem>>, vector<8x128xf32>
      %55 = arith.addf %54, %50 : vector<8x128xf32>
      %c0_25 = arith.constant 0 : index
      %c0_26 = arith.constant 0 : index
      %56 = vector.load %arg5[%c0_25, %c0_26] : memref<8x128xf32, #tpu.memory_space<vmem>>, vector<8x128xf32>
      tpu.vector_store %arg5[%c0_25, %c0_26], %55 {strides = array<i32>} : memref<8x128xf32, #tpu.memory_space<vmem>>, vector<8x128xf32>,
    } else {
    }
    %true = arith.constant true
    %10 = arith.xori %7, %true : i1
    %11 = arith.extui %10 : i1 to i32
    %c0_i32_4 = arith.constant 0 : i32
    %12 = arith.cmpi ne, %11, %c0_i32_4 : i32
    scf.if %12 {
      %cst = arith.constant 0.000000e+00 : f32
      %13 = vector.broadcast %cst : f32 to vector<8x128xf32>
      %c0_i32_5 = arith.constant 0 : i32
      %c16_i32_6 = arith.constant 16 : i32
      %14 = arith.muli %c0_i32_5, %c16_i32_6 : i32
      %15 = tpu.assume_multiple %14, 16 : i32
      %16 = arith.index_cast %15 : i32 to index
      %c0 = arith.constant 0 : index
      %17 = vector.load %arg2[%16, %c0] : memref<16x128xf32, #tpu.memory_space<vmem>>, vector<16x128xf32>
      %18 = arith.index_cast %15 : i32 to index
      %c0_7 = arith.constant 0 : index
      %19 = vector.load %arg3[%18, %c0_7] : memref<16x128xf32, #tpu.memory_space<vmem>>, vector<16x128xf32>
      %20 = arith.negf %17 : vector<16x128xf32>
      %21 = math.exp %20 : vector<16x128xf32>
      %cst_8 = arith.constant 1.000000e+00 : f32
      %22 = vector.broadcast %cst_8 : f32 to vector<16x128xf32>
      %23 = arith.addf %22, %21 : vector<16x128xf32>
      %24 = arith.divf %22, %23 : vector<16x128xf32>
      %cst_9 = arith.constant 9.99999974E-5 : f32
      %25 = vector.broadcast %cst_9 : f32 to vector<16x128xf32>
      %26 = arith.addf %24, %25 : vector<16x128xf32>
      %27 = math.log %26 : vector<16x128xf32>
      %28 = arith.mulf %19, %27 : vector<16x128xf32>
      %cst_10 = arith.constant 1.000000e+00 : f32
      %29 = vector.broadcast %cst_10 : f32 to vector<16x128xf32>
      %30 = arith.subf %29, %19 : vector<16x128xf32>
      %cst_11 = arith.constant 1.000000e+00 : f32
      %31 = vector.broadcast %cst_11 : f32 to vector<16x128xf32>
      %32 = arith.subf %31, %24 : vector<16x128xf32>
      %cst_12 = arith.constant 9.99999974E-5 : f32
      %33 = vector.broadcast %cst_12 : f32 to vector<16x128xf32>
      %34 = arith.addf %32, %33 : vector<16x128xf32>
      %35 = math.log %34 : vector<16x128xf32>
      %36 = arith.mulf %30, %35 : vector<16x128xf32>
      %37 = arith.addf %28, %36 : vector<16x128xf32>
      %cst_13 = arith.constant 0.000000e+00 : f32
      %38 = vector.broadcast %cst_13 : f32 to vector<16x128xf32>
      %39 = arith.subf %38, %37 : vector<16x128xf32>
      %cst_14 = arith.constant 4.000000e+00 : f32
      %40 = vector.broadcast %cst_14 : f32 to vector<16x128xf32>
      %41 = arith.mulf %19, %40 : vector<16x128xf32>
      %cst_15 = arith.constant 1.000000e+00 : f32
      %42 = vector.broadcast %cst_15 : f32 to vector<16x128xf32>
      %43 = arith.addf %41, %42 : vector<16x128xf32>
      %44 = arith.mulf %39, %43 : vector<16x128xf32>
      %45 = tpu.iota {dimensions = array<i32: 0>} : vector<16x128xi32>
      %46 = arith.addi %5, %15 : i32
      %47 = vector.broadcast %46 : i32 to vector<16x128xi32>
      %48 = arith.addi %47, %45 : vector<16x128xi32>
      %c16_i32_16 = arith.constant 16 : i32
      %49 = vector.broadcast %c16_i32_16 : i32 to vector<16x128xi32>
      %50 = arith.cmpi slt, %48, %49 : vector<16x128xi32>
      %cst_17 = arith.constant 0.000000e+00 : f32
      %51 = vector.broadcast %cst_17 : f32 to vector<16x128xf32>
      %52 = arith.select %50, %44, %51 : vector<16x128xi1>, vector<16x128xf32>
      %cst_18 = arith.constant 0.000000e+00 : f32
      %53 = vector.broadcast %cst_18 : f32 to vector<16x128xf32>
      %54 = arith.select %50, %19, %53 : vector<16x128xi1>, vector<16x128xf32>
      %55 = vector.shape_cast %52 : vector<16x128xf32> to vector<2x8x128xf32>
      %cst_19 = arith.constant dense<0.000000e+00> : vector<8x128xf32>
      %56 = vector.multi_reduction <add>, %55, %cst_19 [0] : vector<2x8x128xf32> to vector<8x128xf32>
      %57 = arith.addf %13, %56 : vector<8x128xf32>
      %58 = vector.shape_cast %54 : vector<16x128xf32> to vector<2x8x128xf32>
      %cst_20 = arith.constant dense<0.000000e+00> : vector<8x128xf32>
      %59 = vector.multi_reduction <add>, %58, %cst_20 [0] : vector<2x8x128xf32> to vector<8x128xf32>
      %60 = arith.addf %13, %59 : vector<8x128xf32>
      %c1_i32_21 = arith.constant 1 : i32
      %c0_22 = arith.constant 0 : index
      %c0_23 = arith.constant 0 : index
      %61 = vector.load %arg4[%c0_22, %c0_23] : memref<8x128xf32, #tpu.memory_space<vmem>>, vector<8x128xf32>
      %62 = arith.addf %61, %57 : vector<8x128xf32>
      %c0_24 = arith.constant 0 : index
      %c0_25 = arith.constant 0 : index
      %63 = vector.load %arg4[%c0_24, %c0_25] : memref<8x128xf32, #tpu.memory_space<vmem>>, vector<8x128xf32>
      tpu.vector_store %arg4[%c0_24, %c0_25], %62 {strides = array<i32>} : memref<8x128xf32, #tpu.memory_space<vmem>>, vector<8x128xf32>,
      %c0_26 = arith.constant 0 : index
      %c0_27 = arith.constant 0 : index
      %64 = vector.load %arg5[%c0_26, %c0_27] : memref<8x128xf32, #tpu.memory_space<vmem>>, vector<8x128xf32>
      %65 = arith.addf %64, %60 : vector<8x128xf32>
      %c0_28 = arith.constant 0 : index
      %c0_29 = arith.constant 0 : index
      %66 = vector.load %arg5[%c0_28, %c0_29] : memref<8x128xf32, #tpu.memory_space<vmem>>, vector<8x128xf32>
      tpu.vector_store %arg5[%c0_28, %c0_29], %65 {strides = array<i32>} : memref<8x128xf32, #tpu.memory_space<vmem>>, vector<8x128xf32>,
    } else {
    }
    return
  }
  func.func @transform_0(%arg0: i32, %arg1: i32) -> (i32, i32) {
    %c1_i32 = arith.constant 1 : i32
    %0 = arith.muli %arg0, %c1_i32 : i32
    %1 = arith.addi %0, %arg1 : i32
    %c0_i32 = arith.constant 0 : i32
    %2 = arith.minsi %1, %c0_i32 : i32
    %c0_i32_0 = arith.constant 0 : i32
    %c0_i32_1 = arith.constant 0 : i32
    return %2, %c0_i32_0 : i32, i32
  }
  func.func @transform_1(%arg0: i32, %arg1: i32) -> (i32, i32) {
    %c1_i32 = arith.constant 1 : i32
    %0 = arith.muli %arg0, %c1_i32 : i32
    %1 = arith.addi %0, %arg1 : i32
    %c0_i32 = arith.constant 0 : i32
    %2 = arith.minsi %1, %c0_i32 : i32
    %c0_i32_0 = arith.constant 0 : i32
    %c0_i32_1 = arith.constant 0 : i32
    return %2, %c0_i32_0 : i32, i32
  }
  func.func @transform_2(%arg0: i32, %arg1: i32) -> (i32, i32) {
    %c0_i32 = arith.constant 0 : i32
    %c0_i32_0 = arith.constant 0 : i32
    return %arg0, %c0_i32 : i32, i32
  }
  func.func @transform_3(%arg0: i32, %arg1: i32) -> (i32, i32) {
    %c0_i32 = arith.constant 0 : i32
    %c0_i32_0 = arith.constant 0 : i32
    return %arg0, %c0_i32 : i32, i32
  }
}

</mosaic_0001>

<bundles_post_ra>
// kernel: tpu_custom_call.1
= control target key start
LH: loop header
LB: loop body
LE: loop exit
PB: predicated region body
PF: predicated region fallthrough
CT: control target
= control target key end

     0   :  { %9 = vsyncpa [#allocation3], 0  ;;  %s392_s0 = inlined_call_operand.hbm [shape: f32[16,128], index: 0, kind: input, shape index: {}]   ;;  %s393_s1 = inlined_call_operand.hbm [shape: f32[16,128], index: 1, kind: input, shape index: {}]   ;;  %s394_s2 = inlined_call_operand.hbm [shape: f32[8,128], index: 2, kind: output, shape index: {0}]   ;;  %s395_s3 = inlined_call_operand.hbm [shape: f32[8,128], index: 3, kind: output, shape index: {1}]  }
   0x1   :  { %10 = vsyncpa [#allocation6], 0 }
   0x2   :  { %11 = vsyncpa [#allocation4], 0 }
   0x3   :  { %12 = vsyncpa [#allocation9], 0  ;;  %s354_s12 = smov [#allocation2]  }
   0x4   :  { %s24_s13 = sshll.u32 %s354_s12, 4  ;;  %s25_s13 = int_to_ptr.vmem [resolvable:$true] %s24_s13 }
   0x5   :  { %s274_s14 = scalar_lea.vmem %s25_s13, 256  ;;  %p279_p1 = scmp.lt.s32.totalorder %s25_s13, %s25_s13 }
   0x6   :  { %p275_p0 = scmp.ne.s32.totalorder %s25_s13, %s274_s14  ;;  %p280_p2 = scmp.lt.s32.totalorder %s274_s14, %s274_s14 }
   0x8   :  { %p281_p3 = por %p280_p2, %p279_p1 }
   0xa   :  { %p282_p4 = pnand %p281_p3, %p275_p0 }
   0xc   :  { %285 = shalt.err (!%p282_p4)
}
   0xd   :  { %s355_s15 = smov 128   ;;  %s356_s16 = smov 8  }
   0xe   :  { %30 = dma.hbm_to_vmem [thread:$0]  %s392_s0, 256, %s25_s13, [#allocation3], %s355_s15, %s355_s15, %s356_s16  }
   0xf   :  { %s357_s19 = smov [#allocation5]  }
  0x10   :  { %s42_s20 = sshll.u32 %s357_s19, 4  ;;  %s43_s20 = int_to_ptr.vmem [resolvable:$true] %s42_s20 }
  0x11   :  { %s294_s21 = scalar_lea.vmem %s43_s20, 256  ;;  %p299_p6 = scmp.lt.s32.totalorder %s43_s20, %s43_s20 }
  0x12   :  { %p295_p5 = scmp.ne.s32.totalorder %s43_s20, %s294_s21  ;;  %p300_p7 = scmp.lt.s32.totalorder %s294_s21, %s294_s21 }
  0x14   :  { %p301_p8 = por %p300_p7, %p299_p6 }
  0x16   :  { %p302_p9 = pnand %p301_p8, %p295_p5 }
  0x18   :  { %305 = shalt.err (!%p302_p9)
}
  0x19   :  { %48 = dma.hbm_to_vmem [thread:$0]  %s393_s1, 256, %s43_s20, [#allocation6], %s355_s15, %s355_s15, %s356_s16  }
  0x1a   :  { %346 = dma.done.wait [#allocation3], 256  }
  0x1b   :  { %347 = vsyncadd [#allocation3], 4294967040 }
  0x1c   :  { %348 = dma.done.wait [#allocation6], 256  }
  0x1d   :  { %349 = vsyncadd [#allocation6], 4294967040  ;;  %v76_v0 = vld [vmem:[#allocation2] sm:$0xff]  ;;  %v77_v1 = vld [vmem:[#allocation2 + $0x8] sm:$0xff]  ;;  %s358_s0 = smov [#allocation8]  }
  0x1e   :  { %s221_s24 = sshll.u32 %s358_s0, 4  ;;  %v78_v2 = vld [vmem:[#allocation5] sm:$0xff]  ;;  %v79_v3 = vld [vmem:[#allocation5 + $0x8] sm:$0xff]  ;;  %v239_v4 = vmul.f32 -1.442695, %v76_v0  ;;  %s222_s24 = int_to_ptr.vmem [resolvable:$true] %s221_s24 }
  0x1f   :  { %v240_v5 = vmul.f32 -1.442695, %v77_v1  ;;  %v124_v6 = vadd.f32 %v79_v3, %v78_v2  ;;  %s306_s25 = scalar_lea.vmem %s222_s24, 128  ;;  %p311_p11 = scmp.lt.s32.totalorder %s222_s24, %s222_s24 }
  0x20   :  { %250 = vpow2.f32 %v239_v4  ;;  %p307_p10 = scmp.ne.s32.totalorder %s222_s24, %s306_s25  ;;  %p312_p12 = scmp.lt.s32.totalorder %s306_s25, %s306_s25 }
  0x21   :  { %252 = vpow2.f32 %v240_v5  ;;  %131 = vst [vmem:[#allocation8] sm:$0xff] %v124_v6 }
  0x22   :  { %p313_p13 = por %p312_p12, %p311_p11 }
  0x24   :  { %p314_p0 = pnand %p313_p13, %p307_p10 }
  0x26   :  { %317 = shalt.err (!%p314_p0)
}
  0x27   :  { %224 = dma.vmem_to_hbm [thread:$0]  %s222_s24, 128, %s395_s3, [#allocation9]   ;;  %v100_v22 = vsub.f32 1.0, %v78_v2  ;;  %v101_v25 = vsub.f32 1.0, %v79_v3  ;;  %v116_v29 = vmul.f32 4.0, %v78_v2  ;;  %v117_v32 = vmul.f32 4.0, %v79_v3 }
  0x28   :  { %s359_s3 = smov [#allocation7]  }
  0x29   :  { %v118_v36 = vadd.f32 1.0, %v116_v29  ;;  %v119_v38 = vadd.f32 1.0, %v117_v32  ;;  %s211_s27 = sshll.u32 %s359_s3, 4  ;;  %s212_s27 = int_to_ptr.vmem [resolvable:$true] %s211_s27 }
  0x2a   :  { %s326_s28 = scalar_lea.vmem %s212_s27, 128  ;;  %p331_p2 = scmp.lt.s32.totalorder %s212_s27, %s212_s27 }
  0x2b   :  { %p327_p1 = scmp.ne.s32.totalorder %s212_s27, %s326_s28  ;;  %p332_p3 = scmp.lt.s32.totalorder %s326_s28, %s326_s28 }
  0x2d   :  { %v251_v7 = vpop.eup %250  ;;  %p333_p4 = por %p332_p3, %p331_p2 }
  0x2e   :  { %v253_v8 = vpop.eup %252  ;;  %v86_v9 = vadd.f32 1.0, %v251_v7 }
  0x2f   :  { %v87_v10 = vadd.f32 1.0, %v253_v8  ;;  %p334_p5 = pnand %p333_p4, %p327_p1 }
  0x30   :  { %254 = vrcp.f32 %v86_v9 }
  0x31   :  { %256 = vrcp.f32 %v87_v10 }
  0x3d   :  { %v255_v11 = vpop.eup %254 }
  0x3e   :  { %v257_v12 = vpop.eup %256  ;;  %v92_v13 = vadd.f32 0.0001, %v255_v11  ;;  %v102_v14 = vsub.f32 1.0, %v255_v11 }
  0x3f   :  { %v93_v15 = vadd.f32 0.0001, %v257_v12  ;;  %v103_v16 = vsub.f32 1.0, %v257_v12 }
  0x40   :  { %258 = vlog2.f32 %v92_v13  ;;  %v104_v17 = vadd.f32 0.0001, %v102_v14 }
  0x41   :  { %260 = vlog2.f32 %v93_v15  ;;  %v105_v18 = vadd.f32 0.0001, %v103_v16 }
  0x42   :  { %262 = vlog2.f32 %v104_v17 }
  0x43   :  { %264 = vlog2.f32 %v105_v18 }
  0x4d   :  { %v259_v19 = vpop.eup %258 }
  0x4e   :  { %v261_v20 = vpop.eup %260  ;;  %v95_v21 = vmul.f32 0.6931472, %v259_v19 }
  0x4f   :  { %v263_v23 = vpop.eup %262  ;;  %v97_v24 = vmul.f32 0.6931472, %v261_v20 }
  0x50   :  { %v265_v26 = vpop.eup %264  ;;  %v98_v27 = vmul.f32 %v95_v21, %v78_v2  ;;  %v107_v28 = vmul.f32 0.6931472, %v263_v23 }
  0x51   :  { %v99_v30 = vmul.f32 %v97_v24, %v79_v3  ;;  %v109_v31 = vmul.f32 0.6931472, %v265_v26 }
  0x52   :  { %v110_v33 = vmul.f32 %v107_v28, %v100_v22 }
  0x53   :  { %v111_v34 = vmul.f32 %v109_v31, %v101_v25 }
  0x54   :  { %v112_v35 = vadd.f32 %v110_v33, %v98_v27 }
  0x55   :  { %v113_v37 = vadd.f32 %v111_v34, %v99_v30 }
  0x56   :  { %v114_v39 = vsub.f32 0.0, %v112_v35 }
  0x57   :  { %v115_v40 = vsub.f32 0.0, %v113_v37 }
  0x58   :  { %v120_v41 = vmul.f32 %v118_v36, %v114_v39 }
  0x59   :  { %v121_v42 = vmul.f32 %v119_v38, %v115_v40 }
  0x5b   :  { %v122_v43 = vadd.f32 %v121_v42, %v120_v41 }
  0x5d   :  { %128 = vst [vmem:[#allocation7] sm:$0xff] %v122_v43 }
  0x5e   :  { %337 = shalt.err (!%p334_p5)
}
  0x5f   :  { %214 = dma.vmem_to_hbm [thread:$0]  %s212_s27, 128, %s394_s2, [#allocation4]  }
  0x60   :  { %350 = dma.done.wait [#allocation4], 128  }
  0x61   :  { %351 = vsyncadd [#allocation4], 4294967168 }
  0x62   :  { %352 = dma.done.wait [#allocation9], 128  }
  0x63   :  { %353 = vsyncadd [#allocation9], 4294967168 }
  0x64   :  { %231 = vsyncpa [#allocation3], 1 }
  0x65   :  { %232 = vsyncpa [#allocation6], 1 }
  0x66   :  { %233 = vsyncpa [#allocation4], 1 }
  0x67   :  { %234 = vsyncpa [#allocation9], 1 }

</bundles_post_ra>
